<compile_context>
chip_gen: v7x
topology: tpu7x:2x2x1
jax: 0.10.0
libtpu: 0.0.40
codegen_flags: <defaults>
</compile_context>

<pallas_src>
import functools

import jax
import jax.numpy as jnp
from jax.experimental import pallas as pl
from jax.experimental.pallas import tpu as pltpu


# ---------------------------------------------------------------------------
# Kernel
# ---------------------------------------------------------------------------

def _gumbel_softmax_kernel(x_ref, u_ref, o_ref, *, inv_t, eps, hard):
    """x_ref: (tb, N) logits tile, u_ref: (tb, N) f32 uniform tile."""
    x = x_ref[...].astype(jnp.float32)
    u = u_ref[...]                                  # already f32

    # Gumbel noise:  y = (x - log(-log(U + eps) + eps)) / temperature
    g = jnp.log(-jnp.log(u + eps) + eps)
    y = (x - g) * inv_t                             # temperature folded into a mul

    m = jnp.max(y, axis=1, keepdims=True)           # lane reduction (XLU)

    if hard:
        # one-hot of the first argmax along the class axis; softmax is
        # monotone so argmax(y) == argmax(softmax(y)) -> skip exp/sum/div.
        n = y.shape[1]
        lanes = jax.lax.broadcasted_iota(jnp.int32, y.shape, 1)
        cand = jnp.where(y == m, lanes, n)          # sentinel n for non-max lanes
        idx = jnp.min(cand, axis=1, keepdims=True)
        out = jnp.where(lanes == idx, 1.0, 0.0)
    else:
        e = jnp.exp(y - m)
        s = jnp.sum(e, axis=1, keepdims=True)
        inv = pl.reciprocal(s, approx=False)        # exact: one per row, not per elem
        out = e * inv

    o_ref[...] = out.astype(o_ref.dtype)


# ---------------------------------------------------------------------------
# Wrapper
# ---------------------------------------------------------------------------

def _pick_batch_tile(B, N, x_itemsize):
    """Batch-tile choice:
       * multiple of the sublane packing (8 f32 / 16 bf16) or the full B,
       * double-buffered (x, u_f32, out) blocks stay well inside the 32 MiB
         scoped-VMEM default (also safe on v7x's 64 MiB physical VMEM),
       * >= 2 grid steps when B allows (v7x megacore sharding; the one extra
         ~0.35us step on single-TC v5e/v6e is noise)."""
    sub = max(8, 32 // x_itemsize)                  # 8 for f32, 16 for bf16
    if B <= sub:
        return B                                    # full-extent block is always legal
    lanes = ((N + 127) // 128) * 128                # physical lane padding in VMEM
    row_bytes = 2 * lanes * (2 * x_itemsize + 4)    # 2x double-buffer of x + u(f32) + out
    budget = 16 * 1024 * 1024                       # conservative VMEM budget
    tb_max = max(sub, budget // row_bytes)
    tb = min(tb_max, pl.cdiv(B, 2))                 # keep >= 2 grid steps if possible
    tb = max(sub, (tb // sub) * sub)                # multiple of sublane packing
    return tb


def gumbel_softmax(x, temperature=1.0, hard=False, eps=1e-8, *, u=None, key=None):
    """Gumbel-Softmax sample of x: (B, N).

    `u` is Uniform[0,1) noise of the same shape (kept in f32 inside the
    kernel). If `u is None`, it is drawn with jax.random from `key`
    (PRNGKey(0) by default).
    """
    B, N = x.shape
    if u is None:
        key = jax.random.PRNGKey(0) if key is None else key
        u = jax.random.uniform(key, (B, N), dtype=jnp.float32)
    else:
        # keep noise in f32: bf16 rounding can push u to exactly 1.0 -> NaN in log
        u = jnp.asarray(u, dtype=jnp.float32)

    inv_t = 1.0 / float(temperature)
    itemsize = x.dtype.itemsize
    tb = _pick_batch_tile(B, N, itemsize)
    grid = (pl.cdiv(B, tb),)                        # partial last block handled by Pallas

    kernel = functools.partial(
        _gumbel_softmax_kernel, inv_t=inv_t, eps=float(eps), hard=bool(hard))

    cost = pl.CostEstimate(
        flops=6 * B * N,
        transcendentals=(2 if hard else 3) * B * N,
        bytes_accessed=B * N * (2 * itemsize + 4),
    )

    return pl.pallas_call(
        kernel,
        out_shape=jax.ShapeDtypeStruct((B, N), x.dtype),
        grid_spec=pltpu.PrefetchScalarGridSpec(
            num_scalar_prefetch=0,
            grid=grid,
            # N is a single full-extent block (legal even when N % 128 != 0),
            # so the wrapper never pads or slices the class axis.
            in_specs=[pl.BlockSpec((tb, N), lambda i: (i, 0)),
                      pl.BlockSpec((tb, N), lambda i: (i, 0))],
            out_specs=pl.BlockSpec((tb, N), lambda i: (i, 0)),
        ),
        compiler_params=pltpu.CompilerParams(
            dimension_semantics=("parallel",),
            vmem_limit_bytes=32 * 1024 * 1024,
        ),
        cost_estimate=cost,
    )(x, u)


# ---------------------------------------------------------------------------
# Reference + self-test
# ---------------------------------------------------------------------------

def _reference_soft(x, u, temperature, eps):
    y = x - jnp.log(-jnp.log(u + eps) + eps)
    return jax.nn.softmax(y / temperature, axis=1)


if __name__ == "__main__":
    eps = 1e-8
    root = jax.random.PRNGKey(0)

    # --- case 1: aligned shape, temperature 1.0 ---------------------------
    k1x, k1u, k2x, k2u, k3 = jax.random.split(root, 5)
    B1, N1 = 64, 128
    x1 = jax.random.normal(k1x, (B1, N1), dtype=jnp.float32)
    u1 = jax.random.uniform(k1u, (B1, N1), dtype=jnp.float32)

    y1_soft = jax.block_until_ready(gumbel_softmax(x1, 1.0, False, eps, u=u1))
    y1_hard = jax.block_until_ready(gumbel_softmax(x1, 1.0, True, eps, u=u1))
    ref1 = _reference_soft(x1, u1, 1.0, eps)

    assert y1_soft.shape == (B1, N1)
    assert jnp.allclose(y1_soft, ref1, atol=1e-5), "case1 soft sample mismatch"
    assert jnp.allclose(jnp.sum(y1_hard, axis=1), 1.0), "case1 hard sample not one-hot"
    assert jnp.all(jnp.argmax(y1_hard, axis=1) == jnp.argmax(ref1, axis=1)), \
        "case1 argmax mismatch"

    # --- case 2: non-128 class count, uneven batch grid, temperature 0.5 --
    B2, N2 = 20, 37
    x2 = jax.random.normal(k2x, (B2, N2), dtype=jnp.float32)
    u2 = jax.random.uniform(k2u, (B2, N2), dtype=jnp.float32)

    y2_soft = jax.block_until_ready(gumbel_softmax(x2, 0.5, False, eps, u=u2))
    y2_hard = jax.block_until_ready(gumbel_softmax(x2, 0.5, True, eps, u=u2))
    ref2 = _reference_soft(x2, u2, 0.5, eps)

    assert y2_soft.shape == (B2, N2)
    assert jnp.allclose(y2_soft, ref2, atol=1e-5), "case2 soft sample mismatch"
    assert jnp.allclose(jnp.sum(y2_hard, axis=1), 1.0), "case2 hard sample not one-hot"
    assert jnp.all(jnp.argmax(y2_hard, axis=1) == jnp.argmax(ref2, axis=1)), \
        "case2 argmax mismatch"

    # --- case 3: noise drawn inside the wrapper ----------------------------
    B3, N3 = 16, 12
    x3 = jax.random.normal(k3, (B3, N3), dtype=jnp.float32)
    y3_soft = jax.block_until_ready(gumbel_softmax(x3, 1.0, False, eps, key=k3))
    y3_hard = jax.block_until_ready(gumbel_softmax(x3, 1.0, True, eps, key=k3))

    assert y3_soft.shape == (B3, N3)
    assert jnp.all(y3_soft >= 0.0), "case3 soft sample has negative probs"
    assert jnp.allclose(jnp.sum(y3_soft, axis=1), 1.0, atol=1e-4), \
        "case3 soft rows not normalized"
    assert jnp.allclose(jnp.sum(y3_hard, axis=1), 1.0), "case3 hard sample not one-hot"
    assert jnp.all(jnp.argmax(y3_hard, axis=1) == jnp.argmax(y3_soft, axis=1)), \
        "case3 argmax mismatch"

    print("KERNEL_OK")
</pallas_src>

<mosaic_0001>
module attributes {stable_mosaic.version = 11 : i64} {
  func.func @_gumbel_softmax_kernel(%arg0: i32, %arg1: memref<32x128xf32, #tpu.memory_space<vmem>>, %arg2: memref<32x128xf32, #tpu.memory_space<vmem>>, %arg3: memref<32x128xf32, #tpu.memory_space<vmem>>) attributes {dimension_semantics = [#tpu.dimension_semantics<parallel>], iteration_bounds = array<i64: 2>, scalar_prefetch = 0 : i64, scratch_operands = 0 : i64, tpu.core_type = #tpu.core_type<tc>, window_params = [{transform_indices = @transform_0, window_bounds = array<i64: 32, 128>}, {transform_indices = @transform_1, window_bounds = array<i64: 32, 128>}, {transform_indices = @transform_2, window_bounds = array<i64: 32, 128>}]} {
    %c0 = arith.constant 0 : index
    %c0_0 = arith.constant 0 : index
    %0 = vector.load %arg1[%c0, %c0_0] : memref<32x128xf32, #tpu.memory_space<vmem>>, vector<32x128xf32>
    %c0_1 = arith.constant 0 : index
    %c0_2 = arith.constant 0 : index
    %1 = vector.load %arg2[%c0_1, %c0_2] : memref<32x128xf32, #tpu.memory_space<vmem>>, vector<32x128xf32>
    %cst = arith.constant 9.99999993E-9 : f32
    %2 = vector.broadcast %cst : f32 to vector<32x128xf32>
    %3 = arith.addf %1, %2 : vector<32x128xf32>
    %4 = math.log %3 : vector<32x128xf32>
    %cst_3 = arith.constant 0.000000e+00 : f32
    %5 = vector.broadcast %cst_3 : f32 to vector<32x128xf32>
    %6 = arith.subf %5, %4 : vector<32x128xf32>
    %cst_4 = arith.constant 9.99999993E-9 : f32
    %7 = vector.broadcast %cst_4 : f32 to vector<32x128xf32>
    %8 = arith.addf %6, %7 : vector<32x128xf32>
    %9 = math.log %8 : vector<32x128xf32>
    %10 = arith.subf %0, %9 : vector<32x128xf32>
    %cst_5 = arith.constant 1.000000e+00 : f32
    %11 = vector.broadcast %cst_5 : f32 to vector<32x128xf32>
    %12 = arith.mulf %10, %11 : vector<32x128xf32>
    %cst_6 = arith.constant dense<0xFF800000> : vector<32xf32>
    %13 = vector.multi_reduction <maximumf>, %12, %cst_6 [1] : vector<32x128xf32> to vector<32xf32>
    %14 = vector.shape_cast %13 : vector<32xf32> to vector<32x1xf32>
    %15 = vector.broadcast %14 : vector<32x1xf32> to vector<32x128xf32>
    %16 = arith.subf %12, %15 : vector<32x128xf32>
    %17 = math.exp %16 : vector<32x128xf32>
    %cst_7 = arith.constant dense<0.000000e+00> : vector<32xf32>
    %18 = vector.multi_reduction <add>, %17, %cst_7 [1] : vector<32x128xf32> to vector<32xf32>
    %19 = vector.shape_cast %18 : vector<32xf32> to vector<32x1xf32>
    %20 = tpu.reciprocal %19 : vector<32x1xf32> -> vector<32x1xf32>
    %21 = vector.broadcast %20 : vector<32x1xf32> to vector<32x128xf32>
    %22 = arith.mulf %17, %21 : vector<32x128xf32>
    %c0_8 = arith.constant 0 : index
    %c0_9 = arith.constant 0 : index
    %23 = vector.load %arg3[%c0_8, %c0_9] : memref<32x128xf32, #tpu.memory_space<vmem>>, vector<32x128xf32>
    tpu.vector_store %arg3[%c0_8, %c0_9], %22 {strides = array<i32>} : memref<32x128xf32, #tpu.memory_space<vmem>>, vector<32x128xf32>,
    return
  }
  func.func @transform_0(%arg0: i32) -> (i32, i32) {
    %c0_i32 = arith.constant 0 : i32
    %c0_i32_0 = arith.constant 0 : i32
    return %arg0, %c0_i32 : i32, i32
  }
  func.func @transform_1(%arg0: i32) -> (i32, i32) {
    %c0_i32 = arith.constant 0 : i32
    %c0_i32_0 = arith.constant 0 : i32
    return %arg0, %c0_i32 : i32, i32
  }
  func.func @transform_2(%arg0: i32) -> (i32, i32) {
    %c0_i32 = arith.constant 0 : i32
    %c0_i32_0 = arith.constant 0 : i32
    return %arg0, %c0_i32 : i32, i32
  }
}

</mosaic_0001>

<bundles_post_ra>
// kernel: tpu_custom_call.1
= control target key start
LH: loop header
LB: loop body
LE: loop exit
PB: predicated region body
PF: predicated region fallthrough
CT: control target
= control target key end

     0   :  { %7 = vsyncpa [#allocation3], 0  ;;  %s891_s0 = inlined_call_operand.hbm [shape: f32[64,128], index: 0, kind: input, shape index: {}]   ;;  %s892_s1 = inlined_call_operand.hbm [shape: f32[64,128], index: 1, kind: input, shape index: {}]   ;;  %s893_s2 = inlined_call_operand.hbm [shape: f32[64,128], index: 2, kind: output, shape index: {}]  }
   0x1   :  { %9 = vsyncpa [#allocation3 + $0x1], 0 }
   0x2   :  { %10 = vsyncpa [#allocation6], 0 }
   0x3   :  { %12 = vsyncpa [#allocation6 + $0x1], 0 }
   0x4   :  { %13 = vsyncpa [#allocation4], 0 }
   0x5   :  { %15 = vsyncpa [#allocation4 + $0x1], 0  ;;  %s657_s9 = smov 0   ;;  %s659_s10 = smov 0  }
   0x6   :  { %s661_s11 = smov 0   ;;  %s663_s12 = smov 0  }
   0x7 LB: > { %s678_s13 = sadd.s32 4294967295, %s633_s12   ;;  %s395_s14 = sadd.s32 4294967294, %s633_s12   ;;  %s633_s12 = sphi %s663_s12, %s909_s12   ;;  %s629_s11 = sphi %s661_s11, %s908_s11   ;;  %s625_s10 = sphi %s659_s10, %s907_s10   ;;  %s621_s9 = sphi %s657_s9, %s906_s9  }
   0x8   : > { %s682_s15 = sadd.s32 1, %s633_s12   ;;  %s28_s16 = sadd.s32 1, %s629_s11 }
   0x9   : > { %s25_s17 = ssub.s32 %s633_s12, %s682_s15  ;;  %p35_p0 = scmp.ne.s32.totalorder %s629_s11, %s625_s10 }
   0xa   : > { %p26_p1 = scmp.eq.s32.totalorder %s25_s17, 0  ;;  %p36_p2 = scmp.eq.s32.totalorder %s633_s12, 0 }
   0xb   : > { %p41_p3 = scmp.ne.s32.totalorder %s625_s10, %s621_s9  ;;  %p42_p4 = scmp.eq.s32.totalorder %s678_s13, 0 }
   0xc   : > { %s694_s18 = scalar_select %p26_p1, %s629_s11, %s28_s16  }
   0xd   : > { %p696_p5 = por %p36_p2, %p35_p0  ;;  %p700_p6 = por %p42_p4, %p41_p3 }
   0xe   : > { %p91_p7 = scmp.eq.s32.totalorder %s678_s13, 1  ;;  %p97_p8 = scmp.eq.s32.totalorder %s395_s14, 1 }
   0xf   : > { %s897_s20 = scalar_select %p700_p6, 1, 0 }
  0x10   : > { %p433_p10 = scmp.lt.s32.totalorder %s633_s12, 2  ;;  %p707_p11 = por %p91_p7, %p35_p0 }
  0x11   : > { %p711_p12 = por %p97_p8, %p41_p3  ;;  %s716_s23 = sand.u32 1, %s629_s11  }
  0x12   : > { %s898_s21 = scalar_select %p707_p11, 1, 0 }
  0x13   : > { %s899_s22 = scalar_select %p711_p12, 1, 0 }
  0x14   : > { %s413_s24 = sshll.u32 %s633_s12, 9  ;;  %s398_s25 = sshll.u32 %s716_s23, 5 }
  0x15   : > { %s725_s28 = scalar_lea.hbm %s891_s0, %s413_s24  ;;  %s121_s29 = scalar_lea.vmem [#allocation2], %s398_s25 }
  0x16   : > { %s128_s30 = sshll.u32 %s121_s29, 4  ;;  %p731_p13 = pnand %p433_p10, %p696_p5  ;;  %s735_s30 = int_to_ptr.vmem [resolvable:$true] %s128_s30 }
  0x17   : > { %s118_s4 = scalar_lea.sflag [#allocation3], %s716_s23  ;;  %s503_s5 = scalar_lea.hbm %s725_s28, 512 }
  0x18   : > { %p504_p0 = scmp.ne.s32.totalorder %s725_s28, %s503_s5  ;;  %p505_p1 = pneg %p731_p13 }
  0x19   : > { %s508_s8 = scalar_lea.hbm %s891_s0, 1024  ;;  %p509_p4 = scmp.lt.u32.totalorder %s725_s28, %s891_s0 }
  0x1a   : > { %p506_p2 = pnand %p505_p1, %p504_p0  ;;  %p510_p5 = scmp.lt.u32.totalorder %s508_s8, %s503_s5 }
  0x1b   : > { %p512_p8 = scmp.lt.u32.totalorder %s503_s5, %s725_s28 }
  0x1c   : > { %p507_p3 = pneg %p506_p2  ;;  %p511_p7 = por %p510_p5, %p509_p4 }
  0x1e   : > { %p513_p10 = por %p512_p8, %p511_p7 }
  0x20   : > { %p514_p9 = pnand %p513_p10, %p507_p3 }
  0x22   : > { %517 = shalt.err (!%p514_p9)
}
  0x23   : > { %s518_s17 = scalar_lea.vmem %s735_s30, 512  ;;  %s635_s19 = smov [#allocation2]  }
  0x24   : > { %p519_p0 = scmp.ne.s32.totalorder %s735_s30, %s518_s17  ;;  %s523_s26 = sshll.u32 %s635_s19, 4  ;;  %s524_s26 = int_to_ptr.vmem [resolvable:$false] %s523_s26 }
  0x25   : > { %s525_s27 = scalar_lea.vmem %s524_s26, 1024  ;;  %p526_p11 = scmp.lt.s32.totalorder %s735_s30, %s524_s26 }
  0x26   : > { %p521_p2 = pnand %p519_p0, %p505_p1  ;;  %p527_p4 = scmp.lt.s32.totalorder %s525_s27, %s518_s17 }
  0x28   : > { %p522_p12 = pneg %p521_p2  ;;  %p528_p5 = por %p527_p4, %p526_p11 }
  0x2a   : > { %p529_p7 = pnand %p528_p5, %p522_p12 }
  0x2c   : > { %532 = shalt.err (!%p529_p7)
}
  0x2d   : > { %s636_s29 = smov 128   ;;  %s637_s5 = smov 8  }
  0x2e   : > { %425 = dma.hbm_to_vmem [thread:$0]  (!%p731_p13), %s725_s28, 512, %s735_s30, %s118_s4, %s636_s29, %s636_s29, %s637_s5  }
  0x2f   : > { %p404_p9 = scmp.ge.s32.totalorder %s633_s12, 1  ;;  %p157_p11 = scmp.lt.s32.totalorder %s633_s12, 3 }
  0x30   : > { %s779_s14 = scalar_lea.hbm %s892_s1, %s413_s24  ;;  %s142_s16 = scalar_lea.vmem [#allocation5], %s398_s25 }
  0x31   : > { %p770_p12 = pnand %p404_p9, %p157_p11  ;;  %s149_s17 = sshll.u32 %s142_s16, 4  ;;  %s783_s17 = int_to_ptr.vmem [resolvable:$true] %s149_s17 }
  0x32   : > { %s139_s28 = scalar_lea.sflag [#allocation6], %s716_s23  ;;  %s533_s30 = scalar_lea.hbm %s779_s14, 512 }
  0x33   : > { %p534_p3 = scmp.ne.s32.totalorder %s779_s14, %s533_s30  ;;  %s538_s24 = scalar_lea.hbm %s892_s1, 1024 }
  0x34   : > { %p539_p0 = scmp.lt.u32.totalorder %s779_s14, %s892_s1  ;;  %p540_p2 = scmp.lt.u32.totalorder %s538_s24, %s533_s30 }
  0x35   : > { %p536_p8 = pnand %p534_p3, %p505_p1  ;;  %p542_p5 = scmp.lt.u32.totalorder %s533_s30, %s779_s14 }
  0x36   : > { %p541_p4 = por %p540_p2, %p539_p0 }
  0x37   : > { %p537_p10 = pneg %p536_p8 }
  0x38   : > { %p543_p7 = por %p542_p5, %p541_p4 }
  0x3a   : > { %p544_p9 = pnand %p543_p7, %p537_p10 }
  0x3c   : > { %547 = shalt.err (!%p544_p9)
}
  0x3d   : > { %s548_s25 = scalar_lea.vmem %s783_s17, 512  ;;  %s638_s7 = smov [#allocation5]  }
  0x3e   : > { %p549_p11 = scmp.ne.s32.totalorder %s783_s17, %s548_s25  ;;  %s553_s8 = sshll.u32 %s638_s7, 4  ;;  %s554_s8 = int_to_ptr.vmem [resolvable:$false] %s553_s8 }
  0x3f   : > { %s555_s16 = scalar_lea.vmem %s554_s8, 1024  ;;  %p556_p6 = scmp.lt.s32.totalorder %s783_s17, %s554_s8 }
  0x40   : > { %p551_p3 = pnand %p549_p11, %p505_p1  ;;  %p557_p0 = scmp.lt.s32.totalorder %s555_s16, %s548_s25 }
  0x42   : > { %p552_p8 = pneg %p551_p3  ;;  %p558_p2 = por %p557_p0, %p556_p6 }
  0x44   : > { %p559_p4 = pnand %p558_p2, %p552_p8 }
  0x46   : > { %562 = shalt.err (!%p559_p4)
}
  0x47   : > { %428 = dma.hbm_to_vmem [thread:$0]  (!%p731_p13), %s779_s14, 512, %s783_s17, %s139_s28, %s636_s29, %s636_s29, %s637_s5  }
  0x48   : > { %161 = sbr.rel (%p770_p12) target bundleno = 452 (0x1c4), region = 28  ;;  %s817_s30 = sand.u32 (!%p770_p12), 1, %s625_s10  }
  0x49   : > { %s820_s4 = sshll.u32 (!%p770_p12), %s817_s30, 5  ;;  %s164_s3 = scalar_lea.sflag (!%p770_p12), [#allocation3], %s817_s30 }
  0x4a   : > { %s824_s19 = scalar_lea.vmem (!%p770_p12), [#allocation2], %s820_s4  ;;  %p902_p6 = scmp.ne.s32.totalorder (!%p770_p12), %s897_s20, 0 }
  0x4f   : > { %608 = dma.done.wait (%p902_p6), %s164_s3, 512  }
  0x50   : > { %610 = vsyncadd (%p902_p6), %s164_s3, 4294966784  ;;  %s173_s23 = scalar_lea.sflag [#allocation6], %s817_s30  ;;  %s176_s29 = scalar_lea.vmem [#allocation5], %s820_s4 }
  0x51   : > { %612 = dma.done.wait (%p902_p6), %s173_s23, 512  }
  0x52   : > { %614 = vsyncadd (%p902_p6), %s173_s23, 4294966784  ;;  %v209_v0 = vld [vmem:[%s176_s29] sm:$0xff]  ;;  %v211_v2 = vld [vmem:[%s176_s29 + $0x10] sm:$0xff]  ;;  %s201_s20 = scalar_lea.vmem [#allocation7], %s820_s4  ;;  %s415_s5 = sshll.u32 %s678_s13, 9 }
  0x53   : > { %v213_v1 = vadd.f32 1e-08, %v209_v0  ;;  %v210_v3 = vld [vmem:[%s176_s29 + $0x8] sm:$0xff]  ;;  %v215_v4 = vadd.f32 1e-08, %v211_v2  ;;  %v212_v6 = vld [vmem:[%s176_s29 + $0x18] sm:$0xff]  ;;  %s845_s28 = scalar_lea.hbm %s893_s2, %s415_s5 }
  0x54   : > { %v214_v5 = vadd.f32 1e-08, %v210_v3  ;;  %v216_v7 = vadd.f32 1e-08, %v212_v6  ;;  %v205_v25 = vld [vmem:[%s824_s19] sm:$0xff]  ;;  %v207_v28 = vld [vmem:[%s824_s19 + $0x10] sm:$0xff] }
  0x55   : > { %471 = vlog2.f32 %v213_v1  ;;  %v206_v31 = vld [vmem:[%s824_s19 + $0x8] sm:$0xff]  ;;  %v208_v35 = vld [vmem:[%s824_s19 + $0x18] sm:$0xff]  ;;  %s299_s6 = sshll.u32 %s201_s20, 4  ;;  %s286_s24 = scalar_lea.sflag [#allocation4], %s817_s30  ;;  %s847_s6 = int_to_ptr.vmem [resolvable:$true] %s299_s6 }
  0x56   : > { %473 = vlog2.f32 %v215_v4  ;;  %s563_s26 = scalar_lea.vmem %s847_s6, 512  ;;  %p903_p1 = scmp.ne.s32.totalorder %s898_s21, 0 }
  0x57   : > { %475 = vlog2.f32 %v214_v5  ;;  %p564_p13 = scmp.ne.s32.totalorder %s847_s6, %s563_s26  ;;  %s639_s13 = smov [#allocation7]  }
  0x58   : > { %477 = vlog2.f32 %v216_v7  ;;  %s567_s27 = sshll.u32 %s639_s13, 4  ;;  %s568_s27 = int_to_ptr.vmem [resolvable:$false] %s567_s27 }
  0x59   : > { %p565_p12 = pnand %p564_p13, %p903_p1  ;;  %s569_s25 = scalar_lea.vmem %s568_s27, 1024 }
  0x5a   : > { %p570_p5 = scmp.lt.s32.totalorder %s847_s6, %s568_s27  ;;  %p571_p7 = scmp.lt.s32.totalorder %s569_s25, %s563_s26 }
  0x5b   : > { %p566_p10 = pneg %p565_p12 }
  0x5c   : > { %p572_p9 = por %p571_p7, %p570_p5 }
  0x5e   : > { %p573_p11 = pnand %p572_p9, %p566_p10 }
  0x5f   : > { %v472_v8 = vpop.eup %471 }
  0x60   : > { %v474_v9 = vpop.eup %473  ;;  %v218_v10 = vmul.f32 0.6931472, %v472_v8 }
  0x61   : > { %v476_v11 = vpop.eup %475  ;;  %v222_v12 = vmul.f32 0.6931472, %v474_v9 }
  0x62   : > { %v478_v13 = vpop.eup %477  ;;  %v225_v14 = vsub.f32 0.0, %v218_v10  ;;  %v220_v15 = vmul.f32 0.6931472, %v476_v11 }
  0x63   : > { %v227_v16 = vsub.f32 0.0, %v222_v12  ;;  %v224_v17 = vmul.f32 0.6931472, %v478_v13 }
  0x64   : > { %v229_v18 = vadd.f32 1e-08, %v225_v14  ;;  %v226_v19 = vsub.f32 0.0, %v220_v15 }
  0x65   : > { %v231_v20 = vadd.f32 1e-08, %v227_v16  ;;  %v228_v21 = vsub.f32 0.0, %v224_v17 }
  0x66   : > { %479 = vlog2.f32 %v229_v18  ;;  %v230_v22 = vadd.f32 1e-08, %v226_v19 }
  0x67   : > { %481 = vlog2.f32 %v231_v20  ;;  %v232_v23 = vadd.f32 1e-08, %v228_v21 }
  0x68   : > { %483 = vlog2.f32 %v230_v22 }
  0x69   : > { %485 = vlog2.f32 %v232_v23 }
  0x70   : > { %v480_v24 = vpop.eup %479 }
  0x71   : > { %v482_v26 = vpop.eup %481  ;;  %v234_v27 = vmul.f32 0.6931472, %v480_v24 }
  0x72   : > { %v484_v29 = vpop.eup %483  ;;  %v238_v30 = vmul.f32 0.6931472, %v482_v26 }
  0x73   : > { %v486_v32 = vpop.eup %485  ;;  %v241_v33 = vsub.f32 %v205_v25, %v234_v27  ;;  %v236_v34 = vmul.f32 0.6931472, %v484_v29 }
  0x74   : > { %v243_v36 = vsub.f32 %v207_v28, %v238_v30  ;;  %v240_v37 = vmul.f32 0.6931472, %v486_v32 }
  0x75   : > { %245 = vmax.xlane.f32.xlu0 %v241_v33  ;;  %v242_v38 = vsub.f32 %v206_v31, %v236_v34 }
  0x76   : > { %249 = vmax.xlane.f32.xlu1 %v243_v36  ;;  %v244_v39 = vsub.f32 %v208_v35, %v240_v37 }
  0x79   : > { %247 = vmax.xlane.f32.xlu0 %v242_v38 }
  0x7a   : > { %251 = vmax.xlane.f32.xlu1 %v244_v39 }
 0x102   : > { %v246_v40 = vpop.xlane.xlu0 %245 }
 0x103   : > { %v253_v41 = vsub.f32 %v241_v33, %v246_v40  ;;  %v250_v42 = vpop.xlane.xlu1 %249 }
 0x104   : > { %v255_v43 = vsub.f32 %v243_v36, %v250_v42 }
 0x105   : > { %v257_v44 = vmul.f32 1.442695, %v253_v41 }
 0x106   : > { %v261_v45 = vmul.f32 1.442695, %v255_v43  ;;  %v248_v46 = vpop.xlane.xlu0 %247 }
 0x107   : > { %487 = vpow2.f32 %v257_v44  ;;  %v254_v47 = vsub.f32 %v242_v38, %v248_v46  ;;  %v252_v48 = vpop.xlane.xlu1 %251 }
 0x108   : > { %v256_v49 = vsub.f32 %v244_v39, %v252_v48  ;;  %489 = vpow2.f32 %v261_v45 }
 0x109   : > { %v259_v50 = vmul.f32 1.442695, %v254_v47 }
 0x10a   : > { %v263_v51 = vmul.f32 1.442695, %v256_v49 }
 0x10b   : > { %491 = vpow2.f32 %v259_v50 }
 0x10c   : > { %493 = vpow2.f32 %v263_v51 }
 0x111   : > { %v488_v52 = vpop.eup %487 }
 0x112   : > { %265 = vadd.xlane.f32.xlu0 %v488_v52  ;;  %v490_v53 = vpop.eup %489 }
 0x115   : > { %v492_v54 = vpop.eup %491 }
 0x116   : > { %269 = vadd.xlane.f32.xlu0 %v490_v53  ;;  %267 = vadd.xlane.f32.xlu1 %v492_v54  ;;  %v494_v55 = vpop.eup %493 }
 0x11a   : > { %271 = vadd.xlane.f32.xlu1 %v494_v55 }
 0x19f   : > { %v266_v56 = vpop.xlane.xlu0 %265 }
 0x1a0   : > { %495 = vrcp.f32 %v266_v56 }
 0x1a3   : > { %v268_v57 = vpop.xlane.xlu1 %267  ;;  %v270_v58 = vpop.xlane.xlu0 %269 }
 0x1a4   : > { %497 = vrcp.f32 %v268_v57 }
 0x1a5   : > { %499 = vrcp.f32 %v270_v58 }
 0x1a7   : > { %v272_v59 = vpop.xlane.xlu1 %271 }
 0x1a8   : > { %501 = vrcp.f32 %v272_v59 }
 0x1aa   : > { %v496_v60 = vpop.eup %495 }
 0x1ab   : > { %v277_v61 = vmul.f32 %v496_v60, %v488_v52 }
 0x1ad   : > { %281 = vst [vmem:[%s201_s20] sm:$0xff] %v277_v61 }
 0x1ae   : > { %v498_v62 = vpop.eup %497 }
 0x1af   : > { %v500_v63 = vpop.eup %499  ;;  %v278_v0 = vmul.f32 %v498_v62, %v492_v54 }
 0x1b0   : > { %v279_v1 = vmul.f32 %v500_v63, %v490_v53 }
 0x1b1   : > { %282 = vst [vmem:[%s201_s20 + $0x8] sm:$0xff] %v278_v0 }
 0x1b2   : > { %v502_v2 = vpop.eup %501  ;;  %283 = vst [vmem:[%s201_s20 + $0x10] sm:$0xff] %v279_v1 }
 0x1b3   : > { %v280_v3 = vmul.f32 %v502_v2, %v494_v55 }
 0x1b5   : > { %284 = vst [vmem:[%s201_s20 + $0x18] sm:$0xff] %v280_v3 }
 0x1b6   : > { %576 = shalt.err (!%p573_p11)
}
 0x1b7   : > { %s577_s7 = scalar_lea.hbm %s845_s28, 512  ;;  %s581_s4 = scalar_lea.hbm %s893_s2, 1024 }
 0x1b8   : > { %p578_p3 = scmp.ne.s32.totalorder %s845_s28, %s577_s7  ;;  %p582_p2 = scmp.lt.u32.totalorder %s845_s28, %s893_s2 }
 0x1b9   : > { %p583_p4 = scmp.lt.u32.totalorder %s581_s4, %s577_s7  ;;  %p585_p13 = scmp.lt.u32.totalorder %s577_s7, %s845_s28 }
 0x1ba   : > { %p579_p8 = pnand %p578_p3, %p903_p1 }
 0x1bb   : > { %p584_p6 = por %p583_p4, %p582_p2 }
 0x1bc   : > { %p580_p0 = pneg %p579_p8 }
 0x1bd   : > { %p586_p12 = por %p585_p13, %p584_p6 }
 0x1bf   : > { %p587_p10 = pnand %p586_p12, %p580_p0 }
 0x1c1   : > { %590 = shalt.err (!%p587_p10)
}
 0x1c2   : > { %s640_s23 = smov 128   ;;  %s641_s29 = smov 8  }
 0x1c3   : > { %420 = dma.vmem_to_hbm [thread:$0]  (%p903_p1), %s847_s6, 512, %s845_s28, %s286_s24, %s640_s23, %s640_s23, %s641_s29  }
 0x1c4 PF: > { %s314_s20 = sand.u32 1, %s621_s9   ;;  %p904_p5 = scmp.ne.s32.totalorder %s899_s22, 0 }
 0x1c5   : > { %p905_p7 = scmp.ge.s32.totalorder %s633_s12, 2  ;;  %s315_s5 = scalar_lea.sflag [#allocation4], %s314_s20 }
 0x1c7   : > { %p430_p9 = pnand %p905_p7, %p904_p5 }
 0x1c9   : > { %616 = dma.done.wait (!%p430_p9), %s315_s5, 512  }
 0x1ca   : > { %618 = vsyncadd (!%p430_p9), %s315_s5, 4294966784  ;;  %p18_p11 = scmp.ge.s32.totalorder %s682_s15, 4   ;;  %s906_s9 = smov %s625_s10 }
 0x1cb   : > { %s907_s10 = smov %s629_s11  ;;  %s908_s11 = smov %s694_s18 }
 0x1cc   : > { %s909_s12 = smov %s682_s15  ;;  %20 = sbr.rel (!%p18_p11) target bundleno = 7 (0x7), region = 86 }
 0x1d3   :  { %320 = vsyncpa [#allocation3], 1 }
 0x1d4   :  { %322 = vsyncpa [#allocation3 + $0x1], 1 }
 0x1d5   :  { %323 = vsyncpa [#allocation6], 1 }
 0x1d6   :  { %325 = vsyncpa [#allocation6 + $0x1], 1 }
 0x1d7   :  { %326 = vsyncpa [#allocation4], 1 }
 0x1d8   :  { %328 = vsyncpa [#allocation4 + $0x1], 1 }

</bundles_post_ra>
